<compile_context>
chip_gen: v7x
topology: tpu7x:2x2x1
jax: 0.10.0
libtpu: 0.0.40
codegen_flags: <defaults>
</compile_context>

<pallas_src>
import math

import jax
import jax.numpy as jnp
from jax.experimental import pallas as pl
from jax.experimental.pallas import tpu as pltpu


def _round_up(x: int, m: int) -> int:
    return (x + m - 1) // m * m


def _make_kernel(k: int):
    """Kernel over packed rows: each (TR, W) output row holds k batch rows."""

    def kernel(noise_ref, tab_ref, out_ref):
        noise = noise_ref[...].astype(jnp.float32)           # (TR, k)
        phase = tab_ref[k:k + 1, :]                           # (1, W), broadcast over rows

        if k <= 8:
            # k fused multiply-adds against precomputed masked-frequency rows.
            enc = noise[:, 0:1] * tab_ref[0:1, :]
            for i in range(1, k):
                enc = enc + noise[:, i:i + 1] * tab_ref[i:i + 1, :]
            enc = enc + phase
        else:
            # Large k (tiny dim): ride the MXU instead of a long VALU chain.
            enc = jnp.dot(noise, tab_ref[0:k, :],
                          preferred_element_type=jnp.float32) + phase

        out_ref[...] = jnp.sin(enc).astype(out_ref.dtype)

    return kernel


def positional_encoding(noise_level: jax.Array, dim: int, *,
                        out_dtype=None, use_pallas=None) -> jax.Array:
    """noise_level: (B,) -> (B, dim) sinusoidal encoding (matches PyTorch module)."""
    assert dim % 2 == 0, "dim must be even"
    b = noise_level.shape[0]
    count = dim // 2
    out_dtype = jnp.dtype(noise_level.dtype if out_dtype is None else out_dtype)
    itemsize = out_dtype.itemsize
    noise_itemsize = jnp.dtype(noise_level.dtype).itemsize

    # Small-problem fallback: launch/pad overhead dominates below ~256 KiB out.
    if use_pallas is None:
        use_pallas = b * dim * itemsize >= (256 << 10)
    if not use_pallas:
        return _reference(noise_level, dim).astype(out_dtype)

    # Pack k batch rows per lane row so the last dim W is a multiple of 128.
    g = math.gcd(dim, 128)
    k = 128 // g
    w = k * dim                                              # lcm(dim, 128)

    # Fused constant table (k+1, W): masked freq rows + phase row (all f32).
    j = jnp.arange(w, dtype=jnp.int32) % dim                 # position within one embedding
    freq = jnp.exp((-math.log(10000.0) / count) * (j % count).astype(jnp.float32))
    phase = jnp.where(j >= count, jnp.float32(math.pi / 2.0), jnp.float32(0.0))
    group = jnp.arange(w, dtype=jnp.int32) // dim            # which packed batch slot
    masks = (group[None, :] == jnp.arange(k, dtype=jnp.int32)[:, None]).astype(jnp.float32)
    tab = jnp.concatenate([masks * freq[None, :], phase[None, :]], axis=0)  # (k+1, W)

    # Tile the packed-row axis: ~4 MiB output blocks, rows a multiple of the
    # dtype's sublane packing (8 for 4-byte, 16 for 2-byte, 32 for 1-byte).
    sublane = {4: 8, 2: 16, 1: 32}[itemsize]
    np_needed = pl.cdiv(b, k)
    tr_cap = max(sublane, ((4 << 20) // (w * itemsize)) // sublane * sublane)

    # Keep >= 2 tiles once total output exceeds ~2 MiB so v7x can shard the
    # "parallel" grid axis across its two TensorCores.
    total_out_bytes = np_needed * w * itemsize
    if total_out_bytes > (2 << 20):
        tr_cap = min(tr_cap, _round_up(pl.cdiv(np_needed, 2), sublane))

    tr = max(sublane, min(tr_cap, _round_up(np_needed, sublane)))
    n_tiles = pl.cdiv(np_needed, tr)
    np_total = n_tiles * tr
    bp = np_total * k

    noise_pad = noise_level if bp == b else jnp.pad(noise_level, (0, bp - b))
    noise_packed = noise_pad.reshape(np_total, k)

    cost = pl.CostEstimate(
        flops=(2 * k + 2) * np_total * w,
        transcendentals=np_total * w,                        # one sin per output element
        bytes_accessed=(np_total * k * noise_itemsize
                        + (k + 1) * w * 4
                        + np_total * w * itemsize),
    )

    # Explicit VMEM budget (double-buffered out + noise + table, plus headroom)
    # so the bigger tiles stay legal under v5e's smaller default scoped limit.
    vmem_needed = (2 * tr * w * itemsize
                   + 2 * tr * k * noise_itemsize
                   + 2 * (k + 1) * w * 4)
    vmem_limit = min(vmem_needed + (4 << 20), 48 << 20)

    out_packed = pl.pallas_call(
        _make_kernel(k),
        out_shape=jax.ShapeDtypeStruct((np_total, w), out_dtype),
        grid=(n_tiles,),
        in_specs=[
            pl.BlockSpec((tr, k), lambda i: (i, 0)),         # packed noise rows
            pl.BlockSpec((k + 1, w), lambda i: (0, 0)),      # fused freq/phase table (shared)
        ],
        out_specs=pl.BlockSpec((tr, w), lambda i: (i, 0)),
        compiler_params=pltpu.CompilerParams(
            dimension_semantics=("parallel",),
            vmem_limit_bytes=vmem_limit,
        ),
        cost_estimate=cost,
    )(noise_packed, tab)

    # Free row-major reshape back to (B, dim); drop padded rows.
    return out_packed.reshape(bp, dim)[:b]


def _reference(noise_level: jax.Array, dim: int) -> jax.Array:
    count = dim // 2
    step = jnp.arange(count, dtype=jnp.float32) / count
    enc = noise_level.astype(jnp.float32)[:, None] * jnp.exp(-math.log(10000.0) * step[None, :])
    return jnp.concatenate([jnp.sin(enc), jnp.cos(enc)], axis=-1).astype(noise_level.dtype)


if __name__ == "__main__":
    key = jax.random.PRNGKey(0)
    dim = 64  # PositionalEncoding(dim=64)

    # 1) toy batch, forced through the Pallas kernel (k=2 packed-lane path)
    noise = jax.random.uniform(key, (8,), dtype=jnp.float32)
    out = jax.block_until_ready(positional_encoding(noise, dim, use_pallas=True))
    ref = _reference(noise, dim)
    assert out.shape == (8, dim)
    assert jnp.allclose(out, ref, atol=1e-5, rtol=1e-5), "mismatch vs reference"

    # 2) ragged batch (zero-pad + packed-lane path)
    noise2 = jax.random.uniform(jax.random.PRNGKey(1), (13,), dtype=jnp.float32)
    out2 = jax.block_until_ready(positional_encoding(noise2, dim, use_pallas=True))
    assert jnp.allclose(out2, _reference(noise2, dim), atol=1e-5, rtol=1e-5), "ragged mismatch"

    # 3) k=1 path (dim is a multiple of 128)
    noise3 = jax.random.uniform(jax.random.PRNGKey(2), (24,), dtype=jnp.float32)
    out3 = jax.block_until_ready(positional_encoding(noise3, 128, use_pallas=True))
    assert jnp.allclose(out3, _reference(noise3, 128), atol=1e-5, rtol=1e-5), "k=1 mismatch"

    # 4) bf16 output (halves HBM writeback; sublane rounded to 16)
    noise4 = jax.random.uniform(jax.random.PRNGKey(3), (37,), dtype=jnp.float32)
    out4 = jax.block_until_ready(
        positional_encoding(noise4, dim, out_dtype=jnp.bfloat16, use_pallas=True))
    assert out4.dtype == jnp.bfloat16
    assert jnp.allclose(out4.astype(jnp.float32), _reference(noise4, dim),
                        atol=1e-2, rtol=1e-2), "bf16 mismatch"

    # 5) larger ragged batch: auto path picks Pallas, multi-tile + megacore split
    noise5 = jax.random.uniform(jax.random.PRNGKey(4), (16389,), dtype=jnp.float32)
    out5 = jax.block_until_ready(positional_encoding(noise5, dim))
    assert jnp.allclose(out5, _reference(noise5, dim), atol=1e-5, rtol=1e-5), "large mismatch"

    # 6) tiny auto path falls back to pure JAX (launch overhead would dominate)
    out6 = jax.block_until_ready(positional_encoding(noise, dim))
    assert jnp.allclose(out6, ref, atol=1e-6, rtol=1e-6), "fallback mismatch"

    print("KERNEL_OK")
</pallas_src>

<mosaic_0001>
module attributes {stable_mosaic.version = 11 : i64} {
  func.func @kernel(%arg0: i32, %arg1: memref<8x2xf32, #tpu.memory_space<vmem>>, %arg2: memref<3x128xf32, #tpu.memory_space<vmem>>, %arg3: memref<8x128xf32, #tpu.memory_space<vmem>>) attributes {dimension_semantics = [#tpu.dimension_semantics<parallel>], iteration_bounds = array<i64: 1>, scalar_prefetch = 0 : i64, scratch_operands = 0 : i64, tpu.core_type = #tpu.core_type<tc>, window_params = [{transform_indices = @transform_0, window_bounds = array<i64: 8, 2>}, {pipeline_mode = #tpu.pipeline_mode<synchronous>, transform_indices = @transform_1, window_bounds = array<i64: 3, 128>}, {transform_indices = @transform_2, window_bounds = array<i64: 8, 128>}]} {
    %c0 = arith.constant 0 : index
    %c0_0 = arith.constant 0 : index
    %0 = vector.load %arg1[%c0, %c0_0] : memref<8x2xf32, #tpu.memory_space<vmem>>, vector<8x2xf32>
    %c2 = arith.constant 2 : index
    %c0_1 = arith.constant 0 : index
    %1 = vector.load %arg2[%c2, %c0_1] : memref<3x128xf32, #tpu.memory_space<vmem>>, vector<1x128xf32>
    %2 = vector.extract_strided_slice %0 {offsets = [0, 0], sizes = [8, 1], strides = [1, 1]} : vector<8x2xf32> to vector<8x1xf32>
    %c0_2 = arith.constant 0 : index
    %c0_3 = arith.constant 0 : index
    %3 = vector.load %arg2[%c0_2, %c0_3] : memref<3x128xf32, #tpu.memory_space<vmem>>, vector<1x128xf32>
    %4 = vector.broadcast %2 : vector<8x1xf32> to vector<8x128xf32>
    %5 = vector.broadcast %3 : vector<1x128xf32> to vector<8x128xf32>
    %6 = arith.mulf %4, %5 : vector<8x128xf32>
    %7 = vector.extract_strided_slice %0 {offsets = [0, 1], sizes = [8, 1], strides = [1, 1]} : vector<8x2xf32> to vector<8x1xf32>
    %c1 = arith.constant 1 : index
    %c0_4 = arith.constant 0 : index
    %8 = vector.load %arg2[%c1, %c0_4] : memref<3x128xf32, #tpu.memory_space<vmem>>, vector<1x128xf32>
    %9 = vector.broadcast %7 : vector<8x1xf32> to vector<8x128xf32>
    %10 = vector.broadcast %8 : vector<1x128xf32> to vector<8x128xf32>
    %11 = arith.mulf %9, %10 : vector<8x128xf32>
    %12 = arith.addf %6, %11 : vector<8x128xf32>
    %13 = vector.broadcast %1 : vector<1x128xf32> to vector<8x128xf32>
    %14 = arith.addf %12, %13 : vector<8x128xf32>
    %15 = math.sin %14 : vector<8x128xf32>
    %c0_5 = arith.constant 0 : index
    %c0_6 = arith.constant 0 : index
    %16 = vector.load %arg3[%c0_5, %c0_6] : memref<8x128xf32, #tpu.memory_space<vmem>>, vector<8x128xf32>
    tpu.vector_store %arg3[%c0_5, %c0_6], %15 {strides = array<i32>} : memref<8x128xf32, #tpu.memory_space<vmem>>, vector<8x128xf32>,
    return
  }
  func.func @transform_0(%arg0: i32) -> (i32, i32) {
    %c0_i32 = arith.constant 0 : i32
    %c0_i32_0 = arith.constant 0 : i32
    return %arg0, %c0_i32 : i32, i32
  }
  func.func @transform_1(%arg0: i32) -> (i32, i32) {
    %c0_i32 = arith.constant 0 : i32
    %c0_i32_0 = arith.constant 0 : i32
    %c0_i32_1 = arith.constant 0 : i32
    return %c0_i32, %c0_i32_0 : i32, i32
  }
  func.func @transform_2(%arg0: i32) -> (i32, i32) {
    %c0_i32 = arith.constant 0 : i32
    %c0_i32_0 = arith.constant 0 : i32
    return %arg0, %c0_i32 : i32, i32
  }
}

</mosaic_0001>

<bundles_post_ra>
// kernel: tpu_custom_call.1
= control target key start
LH: loop header
LB: loop body
LE: loop exit
PB: predicated region body
PF: predicated region fallthrough
CT: control target
= control target key end

     0   :  { %v210_v1 = vmov 0   ;;  %s279_s0 = inlined_call_operand.vmem [shape: f32[8,2], index: 0, kind: input, shape index: {}]   ;;  %s280_s1 = inlined_call_operand.vmem [shape: f32[3,128], index: 1, kind: input, shape index: {}]   ;;  %s281_s2 = inlined_call_operand.hbm [shape: f32[8,128], index: 2, kind: output, shape index: {}]  }
   0x1   :  { %v12_v0 = vld [vmem:[%s279_s0] sm:$0xff]  ;;  %180 = vset.pattern.permute.xlu0 %v210_v1 }
   0x2   :  { %7 = vsyncpa [#allocation3], 0  ;;  %17 = vperm.xlu0 %180, %v12_v0   ;;  %v211_v2 = vmov 1   ;;  %v160_v4 = vld [vmem:[%s280_s1] ss:$0 sm:$0xff] }
   0x3   :  { %v161_v5 = vld [vmem:[%s280_s1 + $0x1] ss:$0 sm:$0xff]  ;;  %v162_v9 = vld [vmem:[%s280_s1 + $0x2] ss:$0 sm:$0xff]  ;;  %v212_v22 = vmov 683565275  }
   0x4   :  { %v213_v24 = vmov 2475754826   ;;  %v214_v27 = vmov 2131351028   ;;  %v215_v30 = vmov 2102212464  }
   0x5   :  { %v216_v33 = vmov 920167782   ;;  %v217_v36 = vmov 1326507024   ;;  %s218_s1 = smov [#allocation2]  }
   0x6   :  { %181 = vset.pattern.permute.xlu0 %v211_v2  ;;  %s152_s16 = sshll.u32 %s218_s1, 4  ;;  %s153_s16 = int_to_ptr.vmem [resolvable:$true] %s152_s16 }
   0x7   :  { %27 = vperm.xlu0 %181, %v12_v0   ;;  %s186_s17 = scalar_lea.vmem %s153_s16, 128  ;;  %p191_p1 = scmp.lt.s32.totalorder %s153_s16, %s153_s16 }
   0x8   :  { %p187_p0 = scmp.ne.s32.totalorder %s153_s16, %s186_s17  ;;  %p192_p2 = scmp.lt.s32.totalorder %s186_s17, %s186_s17 }
   0xa   :  { %p193_p3 = por %p192_p2, %p191_p1 }
   0xc   :  { %p194_p4 = pnand %p193_p3, %p187_p0 }
  0x81   :  { %v18_v3 = vpop.permute.xlu0 %17 }
  0x82   :  { %v24_v7 = vmul.f32 %v160_v4, %v18_v3 }
  0x86   :  { %v28_v6 = vpop.permute.xlu0 %27 }
  0x87   :  { %v34_v8 = vmul.f32 %v161_v5, %v28_v6 }
  0x89   :  { %v35_v10 = vadd.f32 %v34_v8, %v24_v7 }
  0x8b   :  { %v246_v11 = vadd.f32 %v162_v9, %v35_v10 }
  0x8d   :  { %v44_v12 = vand.u32 2139095040, %v246_v11  ;;  %v41_v16 = vand.u32 2147483647, %v246_v11  ;;  %vm43_vm7 = vcmp.lt.s32.totalorder %v246_v11, 0  ;;  %vm133_vm12 = vweird.f32 %v246_v11 }
  0x8f   :  { %v45_v13 = vshrl.u32 %v44_v12, 23  ;;  %v48_v20 = vand.u32 8388607, %v41_v16  ;;  %vm42_vm8 = vcmp.le.f32.partialorder %v41_v16, 0.7853982 }
  0x91   :  { %v163_v14 = vadd.s32 4294967169, %v45_v13  ;;  %v49_v38 = vor.u32 8388608, %v48_v20 }
  0x93   :  { %v51_v15 = vadd.s32 1, %v163_v14  ;;  %v89_v52 = vshll.u32 %v49_v38, 8 }
  0x95   :  { %vm52_vm0 = vcmp.gt.s32.totalorder %v51_v15, 0 }
  0x96   :  { %v53_v17 = vsel %vm52_vm0, %v51_v15, 0 }
  0x97   :  { %v55_v18 = vand.u32 31, %v53_v17  ;;  %v54_v21 = vshrl.u32 %v53_v17, 5 }
  0x99   :  { %v56_v19 = vsub.s32 32, %v55_v18  ;;  %v58_v23 = vshll.u32 %v212_v22, %v55_v18  ;;  %v61_v25 = vshll.u32 %v213_v24, %v55_v18  ;;  %v64_v29 = vshll.u32 %v214_v27, %v55_v18 }
  0x9a   :  { %v67_v32 = vshll.u32 %v215_v30, %v55_v18  ;;  %v70_v35 = vshll.u32 %v216_v33, %v55_v18  ;;  %vm73_vm1 = vcmp.lt.s32.totalorder %v54_v21, 1  ;;  %vm76_vm2 = vcmp.lt.s32.totalorder %v54_v21, 4 }
  0x9b   :  { %v59_v26 = vshrl.u32 %v213_v24, %v56_v19  ;;  %v62_v28 = vshrl.u32 %v214_v27, %v56_v19  ;;  %v65_v31 = vshrl.u32 %v215_v30, %v56_v19  ;;  %v68_v34 = vshrl.u32 %v216_v33, %v56_v19 }
  0x9c   :  { %v71_v37 = vshrl.u32 %v217_v36, %v56_v19  ;;  %v57_v47 = vshrl.u32 %v212_v22, %v56_v19  ;;  %vm75_vm3 = vcmp.lt.s32.totalorder %v54_v21, 3  ;;  %vm74_vm4 = vcmp.lt.s32.totalorder %v54_v21, 2 }
  0x9d   :  { %v60_v39 = vor.u32 %v59_v26, %v58_v23  ;;  %v63_v40 = vor.u32 %v62_v28, %v61_v25  ;;  %v66_v41 = vor.u32 %v65_v31, %v64_v29  ;;  %v69_v42 = vor.u32 %v68_v34, %v67_v32 }
  0x9e   :  { %v72_v43 = vor.u32 %v71_v37, %v70_v35 }
  0x9f   :  { %v78_v44 = vsel %vm76_vm2, %v66_v41, 2102212464  ;;  %v81_v45 = vsel %vm73_vm1, %v60_v39, %v63_v40  ;;  %v85_v46 = vsel %vm73_vm1, %v63_v40, %v66_v41  ;;  %v82_v48 = vsel %vm76_vm2, %v69_v42, 920167782 }
  0xa0   :  { %v86_v49 = vsel %vm76_vm2, %v72_v43, 1326507024  ;;  %v83_v50 = vsel %vm75_vm3, %v66_v41, %v82_v48  ;;  %v77_v53 = vsel %vm73_vm1, %v57_v47, %v60_v39  ;;  %v79_v54 = vsel %vm75_vm3, %v63_v40, %v78_v44 }
  0xa1   :  { %v87_v51 = vsel %vm75_vm3, %v69_v42, %v86_v49  ;;  %v84_v55 = vsel %vm74_vm4, %v81_v45, %v83_v50  ;;  %v80_v61 = vsel %vm74_vm4, %v77_v53, %v79_v54 }
  0xa2   :  { %v88_v56 = vsel %vm74_vm4, %v85_v46, %v87_v51  ;;  %v255_v59 = vmul.u32.u64.low %v89_v52, %v84_v55  ;;  %v256_v60 = vmul.u32.u64.high %v89_v52, %v84_v55, %v255_v59  ;;  %v96_v63 = vmul.u32 %v89_v52, %v80_v61 }
  0xa3   :  { %v252_v57 = vmul.u32.u64.low %v89_v52, %v88_v56  ;;  %v253_v58 = vmul.u32.u64.high %v89_v52, %v88_v56, %v252_v57 }
  0xa4   :  { %v99_v62 = vadd.s32 1, %v256_v60 }
  0xa5   :  { %vm98_vm5 = vc.u32 %v253_v58, %v255_v59  ;;  %v97_v12 = vadd.s32 %v255_v59, %v253_v58 }
  0xa6   :  { %v100_v0 = vsel %vm98_vm5, %v99_v62, %v256_v60 }
  0xa7   :  { %v101_v1 = vadd.s32 %v100_v0, %v96_v63 }
  0xa9   :  { %v102_v2 = vadd.s32 536870912, %v101_v1 }
  0xab   :  { %v103_v3 = vshrl.u32 %v102_v2, 30 }
  0xad   :  { %v104_v4 = vshll.u32 %v103_v3, 30  ;;  %v127_v25 = vsub.s32 4, %v103_v3 }
  0xaf   :  { %v105_v5 = vsub.s32 %v101_v1, %v104_v4  ;;  %v128_v28 = vsel %vm43_vm7, %v127_v25, %v103_v3 }
  0xb0   :  { %v130_v30 = vsel %vm42_vm8, 0, %v128_v28 }
  0xb1   :  { %v107_v6 = vsub.s32 0, %v105_v5  ;;  %v134_v31 = vadd.s32 3, %v130_v30 }
  0xb3   :  { %v164_v7 = vmin.u32 %v107_v6, %v105_v5  ;;  %v135_v32 = vand.u32 3, %v134_v31 }
  0xb5   :  { %v109_v8 = vclz %v164_v7  ;;  %vm140_vm9 = vcmp.eq.s32.totalorder %v135_v32, 2  ;;  %vm137_vm10 = vcmp.eq.s32.totalorder %v135_v32, 0  ;;  %vm136_vm11 = vcmp.lt.s32.totalorder %v135_v32, 2 }
  0xb7   :  { %v165_v9 = vadd.s32 4294967294, %v109_v8 }
  0xb9   :  { %vm166_vm6 = vcmp.lt.s32.totalorder %v165_v9, 0 }
  0xba   :  { %v112_v10 = vsel %vm166_vm6, 0, %v165_v9 }
  0xbb   :  { %v113_v13 = vsub.s32 32, %v112_v10  ;;  %v117_v14 = vsub.s32 4294967266, %v112_v10  ;;  %v114_v15 = vshll.u32 %v105_v5, %v112_v10 }
  0xbd   :  { %v115_v17 = vshrl.u32 %v97_v12, %v113_v13  ;;  %v118_v18 = vadd.s32 127, %v117_v14 }
  0xbf   :  { %v116_v19 = vor.u32 %v115_v17, %v114_v15  ;;  %v119_v20 = vshll.u32 %v118_v18, 23 }
  0xc1   :  { %v120_v21 = vor.u32 4788187, %v119_v20  ;;  %v123_v23 = vcvt.s32.f32 %v116_v19 }
  0xc3   :  { %v121_v22 = vand.u32 2147483647, %v120_v21 }
  0xc5   :  { %v124_v24 = vmul.f32 %v123_v23, %v121_v22 }
  0xc7   :  { %v125_v26 = vxor.u32 2147483648, %v124_v24 }
  0xc9   :  { %v126_v27 = vsel %vm43_vm7, %v125_v26, %v124_v24 }
  0xca   :  { %v129_v29 = vsel %vm42_vm8, %v246_v11, %v126_v27 }
  0xcb   :  { %182 = vcosq.f32 %v129_v29 }
  0xcc   :  { %184 = vsinq.f32 %v129_v29 }
  0xd5   :  { %v183_v33 = vpop.eup %182 }
  0xd6   :  { %v185_v34 = vpop.eup %184  ;;  %v141_v35 = vxor.u32 2147483648, %v183_v33 }
  0xd7   :  { %v138_v36 = vxor.u32 2147483648, %v185_v34 }
  0xd8   :  { %v142_v37 = vsel %vm140_vm9, %v141_v35, %v185_v34 }
  0xd9   :  { %v139_v16 = vsel %vm137_vm10, %v183_v33, %v138_v36 }
  0xda   :  { %v143_v38 = vsel %vm136_vm11, %v139_v16, %v142_v37 }
  0xdb   :  { %v144_v39 = vsel %vm133_vm12, nan, %v143_v38 }
  0xdc   :  { %145 = vst [vmem:[#allocation2] sm:$0xff] %v144_v39 }
  0xdd   :  { %197 = shalt.err (!%p194_p4)
}
  0xde   :  { %s198_s20 = scalar_lea.hbm %s281_s2, 128 }
  0xdf   :  { %p199_p5 = scmp.ne.s32.totalorder %s281_s2, %s198_s20  ;;  %p202_p6 = scmp.lt.u32.totalorder %s198_s20, %s281_s2 }
  0xe1   :  { %p204_p7 = pnand %p202_p6, %p199_p5 }
  0xe3   :  { %207 = shalt.err (!%p204_p7)
}
  0xe4   :  { %155 = dma.vmem_to_hbm [thread:$0]  %s153_s16, 128, %s281_s2, [#allocation3]  }
  0xe5   :  { %208 = dma.done.wait [#allocation3], 128  }
  0xe6   :  { %209 = vsyncadd [#allocation3], 4294967168 }
  0xe7   :  { %159 = vsyncpa [#allocation3], 1 }

</bundles_post_ra>
